<compile_context>
chip_gen: v7x
topology: tpu7x:2x2x1
jax: 0.10.0
libtpu: 0.0.40
codegen_flags: <defaults>
</compile_context>

<pallas_src>
import functools

import jax
import jax.numpy as jnp
from jax.experimental import pallas as pl
from jax.experimental.pallas import tpu as pltpu

LN_EPS = 1e-5   # torch.nn.LayerNorm default
LANE = 128
SUBLANE = 8


def _round_up(x, m):
    return (x + m - 1) // m * m


# ----------------------------------------------------------------------------- kernel


def _fused_resblock(x, w13, b13, w2, b2, gamma, beta, h_split, d_real, mask):
    """ResBlock with fc1/fc3 fused into a single MXU matmul.

    Operands are zero-padded to lane-dense widths.  Padded columns of the
    pre-LayerNorm activation are exactly zero (zero weight cols / zero biases),
    so LayerNorm statistics are taken over the real `d_real` columns only
    (`mask` selects them; None means no padding), and zero-padded gamma/beta
    keep the padded output columns at zero.
    """
    hz = jnp.dot(x, w13, preferred_element_type=jnp.float32) + b13
    h = jnp.maximum(hz[:, :h_split], 0.0)     # relu(fc1(x))   (128-aligned slice)
    skip = hz[:, h_split:]                    # fc3(x)
    out = jnp.dot(h, w2, preferred_element_type=jnp.float32) + b2 + skip

    inv_d = 1.0 / d_real
    if mask is None:
        mu = jnp.mean(out, axis=-1, keepdims=True)
        c = out - mu
    else:
        # padded columns of `out` are exactly zero -> full-width sum == real sum
        mu = jnp.sum(out, axis=-1, keepdims=True) * inv_d
        c = jnp.where(mask, out - mu, 0.0)
    var = jnp.sum(c * c, axis=-1, keepdims=True) * inv_d
    return c * jax.lax.rsqrt(var + LN_EPS) * gamma + beta


def tide_decoder_kernel(n_shared, d_hidden, out_dim,
                        x_ref,
                        sw13, sb13, sw2, sb2, sg, sbt,
                        fw13, fb13, fw2, fb2, fg, fbt,
                        o_ref):
    tb = x_ref.shape[0]
    h_split = sw2.shape[0]          # padded hidden width (multiple of 128)
    d_pad = sw2.shape[1]            # padded shared-block output width
    out_pad = fw2.shape[1]          # padded final-block output width

    x = x_ref[...]

    # Hoist shared-weight VMEM loads out of the repeated-layer loop.
    w13 = sw13[...]; b13 = sb13[...]
    w2 = sw2[...];  b2 = sb2[...]
    g = sg[...];    bt = sbt[...]

    # Hoist LayerNorm column masks (iota/compare) out of the unrolled loop.
    mask_s = None if d_hidden == d_pad else (
        jax.lax.broadcasted_iota(jnp.int32, (tb, d_pad), 1) < d_hidden)
    mask_f = None if out_dim == out_pad else (
        jax.lax.broadcasted_iota(jnp.int32, (tb, out_pad), 1) < out_dim)

    def body(_, xc):
        return _fused_resblock(xc, w13, b13, w2, b2, g, bt,
                               h_split, d_hidden, mask_s)

    # (n_layers - 1) applications of the *same* ResBlock (shared weights).
    x = jax.lax.fori_loop(0, n_shared, body, x, unroll=True)

    # Final ResBlock: d_hidden -> n_pred_steps * n_pred_features (padded to 128).
    y = _fused_resblock(x, fw13[...], fb13[...], fw2[...], fb2[...],
                        fg[...], fbt[...], h_split, out_dim, mask_f)
    o_ref[...] = y.astype(o_ref.dtype)


# ----------------------------------------------------------------------------- wrapper


def _pad2(a, rows, cols):
    r, c = a.shape
    return jnp.pad(a, ((0, rows - r), (0, cols - c)))


def _pack_resblock(params, d_in_pad, h_pad, out_pad):
    """Zero-pad a ResBlock's params to lane-dense widths and fuse fc1/fc3."""
    w1, b1, w2, b2, w3, b3, gamma, beta = params
    w13 = jnp.concatenate(
        [_pad2(w1, d_in_pad, h_pad), _pad2(w3, d_in_pad, out_pad)], axis=1)
    b13 = jnp.concatenate([_pad2(b1, 1, h_pad), _pad2(b3, 1, out_pad)], axis=1)
    return (w13, b13,
            _pad2(w2, h_pad, out_pad), _pad2(b2, 1, out_pad),
            _pad2(gamma, 1, out_pad), _pad2(beta, 1, out_pad))


def tide_decoder_forward(X, shared_params, final_params,
                         n_layers, n_pred_steps, n_pred_features):
    B, d_hidden = X.shape
    out_dim = n_pred_steps * n_pred_features

    D_PAD = _round_up(d_hidden, LANE)
    OUT_PAD = _round_up(out_dim, LANE)

    # Batch tile: multiple of 8 sublanes; up to 256 rows so per-grid-step
    # overhead (~0.35 us) is amortized.  Tiles + resident weights are well
    # under the scoped-VMEM limit on every generation (incl. v7x's 64 MiB).
    TB = 256 if B >= 256 else _round_up(B, SUBLANE)
    B_pad = _round_up(B, TB)

    X_p = _pad2(X, B_pad, D_PAD)
    shared_p = _pack_resblock(shared_params, D_PAD, D_PAD, D_PAD)
    final_p = _pack_resblock(final_params, D_PAD, D_PAD, OUT_PAD)
    weights = shared_p + final_p

    n_shared = n_layers - 1
    kernel = functools.partial(tide_decoder_kernel, n_shared, d_hidden, out_dim)

    grid = (B_pad // TB,)
    x_spec = pl.BlockSpec((TB, D_PAD), lambda i: (i, 0))
    # Constant index_map -> weights stay VMEM-resident across batch tiles.
    w_specs = [pl.BlockSpec(w.shape, lambda i: (0, 0)) for w in weights]
    out_spec = pl.BlockSpec((TB, OUT_PAD), lambda i: (i, 0))

    flops_per_row = (n_shared * (2 * D_PAD * (2 * D_PAD) + 2 * D_PAD * D_PAD)
                     + (2 * D_PAD * (D_PAD + OUT_PAD) + 2 * D_PAD * OUT_PAD))
    cost = pl.CostEstimate(
        flops=int(B_pad * flops_per_row),
        transcendentals=int(B_pad * n_layers),
        bytes_accessed=int(4 * (X_p.size + sum(w.size for w in weights)
                                + B_pad * OUT_PAD)),
    )

    out = pl.pallas_call(
        kernel,
        out_shape=jax.ShapeDtypeStruct((B_pad, OUT_PAD), X.dtype),
        grid=grid,
        in_specs=[x_spec] + w_specs,
        out_specs=out_spec,
        compiler_params=pltpu.CompilerParams(
            dimension_semantics=("parallel",),      # megacore sharding on v7x
            vmem_limit_bytes=32 * 1024 * 1024,
        ),
        cost_estimate=cost,
    )(X_p, *weights)

    return out[:B, :out_dim].reshape(B, n_pred_steps, n_pred_features)


# ----------------------------------------------------------------------------- reference


def make_resblock_params(key, d_in, d_hidden, d_out):
    ks = jax.random.split(key, 6)
    scale_in = 1.0 / jnp.sqrt(d_in)
    scale_h = 1.0 / jnp.sqrt(d_hidden)
    # weights stored (in, out) so the kernel does x @ W
    w1 = jax.random.uniform(ks[0], (d_in, d_hidden), jnp.float32, -scale_in, scale_in)
    b1 = jax.random.uniform(ks[1], (1, d_hidden), jnp.float32, -scale_in, scale_in)
    w2 = jax.random.uniform(ks[2], (d_hidden, d_out), jnp.float32, -scale_h, scale_h)
    b2 = jax.random.uniform(ks[3], (1, d_out), jnp.float32, -scale_h, scale_h)
    w3 = jax.random.uniform(ks[4], (d_in, d_out), jnp.float32, -scale_in, scale_in)
    b3 = jax.random.uniform(ks[5], (1, d_out), jnp.float32, -scale_in, scale_in)
    gamma = jnp.ones((1, d_out), jnp.float32)
    beta = jnp.zeros((1, d_out), jnp.float32)
    return (w1, b1, w2, b2, w3, b3, gamma, beta)


def _resblock_ref(x, w1, b1, w2, b2, w3, b3, gamma, beta):
    h = jnp.maximum(jnp.dot(x, w1, preferred_element_type=jnp.float32) + b1, 0.0)
    out = jnp.dot(h, w2, preferred_element_type=jnp.float32) + b2
    out = out + jnp.dot(x, w3, preferred_element_type=jnp.float32) + b3
    mu = jnp.mean(out, axis=-1, keepdims=True)
    var = jnp.mean((out - mu) ** 2, axis=-1, keepdims=True)
    return (out - mu) * jax.lax.rsqrt(var + LN_EPS) * gamma + beta


def reference_forward(X, shared_params, final_params, n_layers):
    x = X
    for _ in range(n_layers - 1):
        x = _resblock_ref(x, *shared_params)
    return _resblock_ref(x, *final_params)


# ----------------------------------------------------------------------------- demo


if __name__ == "__main__":
    # Small, deterministic config consistent with the module.
    n_steps = 8            # unused in forward (residual_proj never called)
    n_pred_steps = 8
    n_pred_features = 4
    n_layers = 3
    d_hidden = 32
    d_feature_encode = 2   # unused in forward (final_temporal_decoder never called)
    batch = 2

    key = jax.random.PRNGKey(0)
    k_x, k_shared, k_final = jax.random.split(key, 3)

    X = jax.random.normal(k_x, (batch, d_hidden), jnp.float32)
    shared_params = make_resblock_params(k_shared, d_hidden, d_hidden, d_hidden)
    final_params = make_resblock_params(
        k_final, d_hidden, d_hidden, n_pred_steps * n_pred_features
    )

    out = tide_decoder_forward(
        X, shared_params, final_params, n_layers, n_pred_steps, n_pred_features
    )
    out = jax.block_until_ready(out)

    assert out.shape == (batch, n_pred_steps, n_pred_features)

    ref = reference_forward(X, shared_params, final_params, n_layers)
    ref = ref.reshape(batch, n_pred_steps, n_pred_features)
    assert jnp.allclose(out, ref, atol=1e-5, rtol=1e-5), (
        float(jnp.max(jnp.abs(out - ref))))

    print("KERNEL_OK")
</pallas_src>

<mosaic_0001>
module attributes {stable_mosaic.version = 11 : i64} {
  func.func @tide_decoder_kernel(%arg0: i32, %arg1: memref<8x128xf32, #tpu.memory_space<vmem>>, %arg2: memref<128x256xf32, #tpu.memory_space<vmem>>, %arg3: memref<1x256xf32, #tpu.memory_space<vmem>>, %arg4: memref<128x128xf32, #tpu.memory_space<vmem>>, %arg5: memref<1x128xf32, #tpu.memory_space<vmem>>, %arg6: memref<1x128xf32, #tpu.memory_space<vmem>>, %arg7: memref<1x128xf32, #tpu.memory_space<vmem>>, %arg8: memref<128x256xf32, #tpu.memory_space<vmem>>, %arg9: memref<1x256xf32, #tpu.memory_space<vmem>>, %arg10: memref<128x128xf32, #tpu.memory_space<vmem>>, %arg11: memref<1x128xf32, #tpu.memory_space<vmem>>, %arg12: memref<1x128xf32, #tpu.memory_space<vmem>>, %arg13: memref<1x128xf32, #tpu.memory_space<vmem>>, %arg14: memref<8x128xf32, #tpu.memory_space<vmem>>) attributes {dimension_semantics = [#tpu.dimension_semantics<parallel>], iteration_bounds = array<i64: 1>, scalar_prefetch = 0 : i64, scratch_operands = 0 : i64, tpu.core_type = #tpu.core_type<tc>, window_params = [{transform_indices = @transform_0, window_bounds = array<i64: 8, 128>}, {pipeline_mode = #tpu.pipeline_mode<synchronous>, transform_indices = @transform_1, window_bounds = array<i64: 128, 256>}, {pipeline_mode = #tpu.pipeline_mode<synchronous>, transform_indices = @transform_2, window_bounds = array<i64: 1, 256>}, {pipeline_mode = #tpu.pipeline_mode<synchronous>, transform_indices = @transform_3, window_bounds = array<i64: 128, 128>}, {pipeline_mode = #tpu.pipeline_mode<synchronous>, transform_indices = @transform_4, window_bounds = array<i64: 1, 128>}, {pipeline_mode = #tpu.pipeline_mode<synchronous>, transform_indices = @transform_5, window_bounds = array<i64: 1, 128>}, {pipeline_mode = #tpu.pipeline_mode<synchronous>, transform_indices = @transform_6, window_bounds = array<i64: 1, 128>}, {pipeline_mode = #tpu.pipeline_mode<synchronous>, transform_indices = @transform_7, window_bounds = array<i64: 128, 256>}, {pipeline_mode = #tpu.pipeline_mode<synchronous>, transform_indices = @transform_8, window_bounds = array<i64: 1, 256>}, {pipeline_mode = #tpu.pipeline_mode<synchronous>, transform_indices = @transform_9, window_bounds = array<i64: 128, 128>}, {pipeline_mode = #tpu.pipeline_mode<synchronous>, transform_indices = @transform_10, window_bounds = array<i64: 1, 128>}, {pipeline_mode = #tpu.pipeline_mode<synchronous>, transform_indices = @transform_11, window_bounds = array<i64: 1, 128>}, {pipeline_mode = #tpu.pipeline_mode<synchronous>, transform_indices = @transform_12, window_bounds = array<i64: 1, 128>}, {transform_indices = @transform_13, window_bounds = array<i64: 8, 128>}]} {
    %c0 = arith.constant 0 : index
    %c0_0 = arith.constant 0 : index
    %0 = vector.load %arg1[%c0, %c0_0] : memref<8x128xf32, #tpu.memory_space<vmem>>, vector<8x128xf32>
    %c0_1 = arith.constant 0 : index
    %c0_2 = arith.constant 0 : index
    %1 = vector.load %arg2[%c0_1, %c0_2] : memref<128x256xf32, #tpu.memory_space<vmem>>, vector<128x256xf32>
    %c0_3 = arith.constant 0 : index
    %c0_4 = arith.constant 0 : index
    %2 = vector.load %arg3[%c0_3, %c0_4] : memref<1x256xf32, #tpu.memory_space<vmem>>, vector<1x256xf32>
    %c0_5 = arith.constant 0 : index
    %c0_6 = arith.constant 0 : index
    %3 = vector.load %arg4[%c0_5, %c0_6] : memref<128x128xf32, #tpu.memory_space<vmem>>, vector<128x128xf32>
    %c0_7 = arith.constant 0 : index
    %c0_8 = arith.constant 0 : index
    %4 = vector.load %arg5[%c0_7, %c0_8] : memref<1x128xf32, #tpu.memory_space<vmem>>, vector<1x128xf32>
    %c0_9 = arith.constant 0 : index
    %c0_10 = arith.constant 0 : index
    %5 = vector.load %arg6[%c0_9, %c0_10] : memref<1x128xf32, #tpu.memory_space<vmem>>, vector<1x128xf32>
    %c0_11 = arith.constant 0 : index
    %c0_12 = arith.constant 0 : index
    %6 = vector.load %arg7[%c0_11, %c0_12] : memref<1x128xf32, #tpu.memory_space<vmem>>, vector<1x128xf32>
    %7 = tpu.iota {dimensions = array<i32: 1>} : vector<8x128xi32>
    %c32_i32 = arith.constant 32 : i32
    %8 = vector.broadcast %c32_i32 : i32 to vector<8x128xi32>
    %9 = arith.cmpi slt, %7, %8 : vector<8x128xi32>
    %10 = tpu.iota {dimensions = array<i32: 1>} : vector<8x128xi32>
    %c32_i32_13 = arith.constant 32 : i32
    %11 = vector.broadcast %c32_i32_13 : i32 to vector<8x128xi32>
    %12 = arith.cmpi slt, %10, %11 : vector<8x128xi32>
    %c0_i32 = arith.constant 0 : i32
    %cst = arith.constant dense<0.000000e+00> : vector<8x256xf32>
    %13 = tpu.matmul %0, %1, %cst {dimension_numbers = #tpu.dot_dimension_numbers<[1], [0], [0], [1], [0, 0, 1, 1], [], []>} : vector<8x128xf32>, vector<128x256xf32>, vector<8x256xf32> -> vector<8x256xf32>
    %14 = vector.broadcast %2 : vector<1x256xf32> to vector<8x256xf32>
    %15 = arith.addf %13, %14 : vector<8x256xf32>
    %16 = vector.extract_strided_slice %15 {offsets = [0, 0], sizes = [8, 128], strides = [1, 1]} : vector<8x256xf32> to vector<8x128xf32>
    %cst_14 = arith.constant 0.000000e+00 : f32
    %17 = vector.broadcast %cst_14 : f32 to vector<8x128xf32>
    %18 = arith.maximumf %16, %17 : vector<8x128xf32>
    %19 = vector.extract_strided_slice %15 {offsets = [0, 128], sizes = [8, 128], strides = [1, 1]} : vector<8x256xf32> to vector<8x128xf32>
    %cst_15 = arith.constant dense<0.000000e+00> : vector<8x128xf32>
    %20 = tpu.matmul %18, %3, %cst_15 {dimension_numbers = #tpu.dot_dimension_numbers<[1], [0], [0], [1], [0, 0, 1, 1], [], []>} : vector<8x128xf32>, vector<128x128xf32>, vector<8x128xf32> -> vector<8x128xf32>
    %21 = vector.broadcast %4 : vector<1x128xf32> to vector<8x128xf32>
    %22 = arith.addf %20, %21 : vector<8x128xf32>
    %23 = arith.addf %22, %19 : vector<8x128xf32>
    %cst_16 = arith.constant dense<0.000000e+00> : vector<8xf32>
    %24 = vector.multi_reduction <add>, %23, %cst_16 [1] : vector<8x128xf32> to vector<8xf32>
    %25 = vector.shape_cast %24 : vector<8xf32> to vector<8x1xf32>
    %cst_17 = arith.constant 3.125000e-02 : f32
    %26 = vector.broadcast %cst_17 : f32 to vector<8x1xf32>
    %27 = arith.mulf %25, %26 : vector<8x1xf32>
    %28 = vector.broadcast %27 : vector<8x1xf32> to vector<8x128xf32>
    %29 = arith.subf %23, %28 : vector<8x128xf32>
    %cst_18 = arith.constant 0.000000e+00 : f32
    %30 = vector.broadcast %cst_18 : f32 to vector<8x128xf32>
    %31 = arith.select %9, %29, %30 : vector<8x128xi1>, vector<8x128xf32>
    %32 = arith.mulf %31, %31 : vector<8x128xf32>
    %cst_19 = arith.constant dense<0.000000e+00> : vector<8xf32>
    %33 = vector.multi_reduction <add>, %32, %cst_19 [1] : vector<8x128xf32> to vector<8xf32>
    %34 = vector.shape_cast %33 : vector<8xf32> to vector<8x1xf32>
    %cst_20 = arith.constant 3.125000e-02 : f32
    %35 = vector.broadcast %cst_20 : f32 to vector<8x1xf32>
    %36 = arith.mulf %34, %35 : vector<8x1xf32>
    %cst_21 = arith.constant 9.99999974E-6 : f32
    %37 = vector.broadcast %cst_21 : f32 to vector<8x1xf32>
    %38 = arith.addf %36, %37 : vector<8x1xf32>
    %39 = math.rsqrt %38 : vector<8x1xf32>
    %40 = vector.broadcast %39 : vector<8x1xf32> to vector<8x128xf32>
    %41 = arith.mulf %31, %40 : vector<8x128xf32>
    %42 = vector.broadcast %5 : vector<1x128xf32> to vector<8x128xf32>
    %43 = arith.mulf %41, %42 : vector<8x128xf32>
    %44 = vector.broadcast %6 : vector<1x128xf32> to vector<8x128xf32>
    %45 = arith.addf %43, %44 : vector<8x128xf32>
    %c1_i32 = arith.constant 1 : i32
    %cst_22 = arith.constant dense<0.000000e+00> : vector<8x256xf32>
    %46 = tpu.matmul %45, %1, %cst_22 {dimension_numbers = #tpu.dot_dimension_numbers<[1], [0], [0], [1], [0, 0, 1, 1], [], []>} : vector<8x128xf32>, vector<128x256xf32>, vector<8x256xf32> -> vector<8x256xf32>
    %47 = vector.broadcast %2 : vector<1x256xf32> to vector<8x256xf32>
    %48 = arith.addf %46, %47 : vector<8x256xf32>
    %49 = vector.extract_strided_slice %48 {offsets = [0, 0], sizes = [8, 128], strides = [1, 1]} : vector<8x256xf32> to vector<8x128xf32>
    %cst_23 = arith.constant 0.000000e+00 : f32
    %50 = vector.broadcast %cst_23 : f32 to vector<8x128xf32>
    %51 = arith.maximumf %49, %50 : vector<8x128xf32>
    %52 = vector.extract_strided_slice %48 {offsets = [0, 128], sizes = [8, 128], strides = [1, 1]} : vector<8x256xf32> to vector<8x128xf32>
    %cst_24 = arith.constant dense<0.000000e+00> : vector<8x128xf32>
    %53 = tpu.matmul %51, %3, %cst_24 {dimension_numbers = #tpu.dot_dimension_numbers<[1], [0], [0], [1], [0, 0, 1, 1], [], []>} : vector<8x128xf32>, vector<128x128xf32>, vector<8x128xf32> -> vector<8x128xf32>
    %54 = vector.broadcast %4 : vector<1x128xf32> to vector<8x128xf32>
    %55 = arith.addf %53, %54 : vector<8x128xf32>
    %56 = arith.addf %55, %52 : vector<8x128xf32>
    %cst_25 = arith.constant dense<0.000000e+00> : vector<8xf32>
    %57 = vector.multi_reduction <add>, %56, %cst_25 [1] : vector<8x128xf32> to vector<8xf32>
    %58 = vector.shape_cast %57 : vector<8xf32> to vector<8x1xf32>
    %cst_26 = arith.constant 3.125000e-02 : f32
    %59 = vector.broadcast %cst_26 : f32 to vector<8x1xf32>
    %60 = arith.mulf %58, %59 : vector<8x1xf32>
    %61 = vector.broadcast %60 : vector<8x1xf32> to vector<8x128xf32>
    %62 = arith.subf %56, %61 : vector<8x128xf32>
    %cst_27 = arith.constant 0.000000e+00 : f32
    %63 = vector.broadcast %cst_27 : f32 to vector<8x128xf32>
    %64 = arith.select %9, %62, %63 : vector<8x128xi1>, vector<8x128xf32>
    %65 = arith.mulf %64, %64 : vector<8x128xf32>
    %cst_28 = arith.constant dense<0.000000e+00> : vector<8xf32>
    %66 = vector.multi_reduction <add>, %65, %cst_28 [1] : vector<8x128xf32> to vector<8xf32>
    %67 = vector.shape_cast %66 : vector<8xf32> to vector<8x1xf32>
    %cst_29 = arith.constant 3.125000e-02 : f32
    %68 = vector.broadcast %cst_29 : f32 to vector<8x1xf32>
    %69 = arith.mulf %67, %68 : vector<8x1xf32>
    %cst_30 = arith.constant 9.99999974E-6 : f32
    %70 = vector.broadcast %cst_30 : f32 to vector<8x1xf32>
    %71 = arith.addf %69, %70 : vector<8x1xf32>
    %72 = math.rsqrt %71 : vector<8x1xf32>
    %73 = vector.broadcast %72 : vector<8x1xf32> to vector<8x128xf32>
    %74 = arith.mulf %64, %73 : vector<8x128xf32>
    %75 = vector.broadcast %5 : vector<1x128xf32> to vector<8x128xf32>
    %76 = arith.mulf %74, %75 : vector<8x128xf32>
    %77 = vector.broadcast %6 : vector<1x128xf32> to vector<8x128xf32>
    %78 = arith.addf %76, %77 : vector<8x128xf32>
    %c0_31 = arith.constant 0 : index
    %c0_32 = arith.constant 0 : index
    %79 = vector.load %arg8[%c0_31, %c0_32] : memref<128x256xf32, #tpu.memory_space<vmem>>, vector<128x256xf32>
    %c0_33 = arith.constant 0 : index
    %c0_34 = arith.constant 0 : index
    %80 = vector.load %arg9[%c0_33, %c0_34] : memref<1x256xf32, #tpu.memory_space<vmem>>, vector<1x256xf32>
    %c0_35 = arith.constant 0 : index
    %c0_36 = arith.constant 0 : index
    %81 = vector.load %arg10[%c0_35, %c0_36] : memref<128x128xf32, #tpu.memory_space<vmem>>, vector<128x128xf32>
    %c0_37 = arith.constant 0 : index
    %c0_38 = arith.constant 0 : index
    %82 = vector.load %arg11[%c0_37, %c0_38] : memref<1x128xf32, #tpu.memory_space<vmem>>, vector<1x128xf32>
    %c0_39 = arith.constant 0 : index
    %c0_40 = arith.constant 0 : index
    %83 = vector.load %arg12[%c0_39, %c0_40] : memref<1x128xf32, #tpu.memory_space<vmem>>, vector<1x128xf32>
    %c0_41 = arith.constant 0 : index
    %c0_42 = arith.constant 0 : index
    %84 = vector.load %arg13[%c0_41, %c0_42] : memref<1x128xf32, #tpu.memory_space<vmem>>, vector<1x128xf32>
    %cst_43 = arith.constant dense<0.000000e+00> : vector<8x256xf32>
    %85 = tpu.matmul %78, %79, %cst_43 {dimension_numbers = #tpu.dot_dimension_numbers<[1], [0], [0], [1], [0, 0, 1, 1], [], []>} : vector<8x128xf32>, vector<128x256xf32>, vector<8x256xf32> -> vector<8x256xf32>
    %86 = vector.broadcast %80 : vector<1x256xf32> to vector<8x256xf32>
    %87 = arith.addf %85, %86 : vector<8x256xf32>
    %88 = vector.extract_strided_slice %87 {offsets = [0, 0], sizes = [8, 128], strides = [1, 1]} : vector<8x256xf32> to vector<8x128xf32>
    %cst_44 = arith.constant 0.000000e+00 : f32
    %89 = vector.broadcast %cst_44 : f32 to vector<8x128xf32>
    %90 = arith.maximumf %88, %89 : vector<8x128xf32>
    %91 = vector.extract_strided_slice %87 {offsets = [0, 128], sizes = [8, 128], strides = [1, 1]} : vector<8x256xf32> to vector<8x128xf32>
    %cst_45 = arith.constant dense<0.000000e+00> : vector<8x128xf32>
    %92 = tpu.matmul %90, %81, %cst_45 {dimension_numbers = #tpu.dot_dimension_numbers<[1], [0], [0], [1], [0, 0, 1, 1], [], []>} : vector<8x128xf32>, vector<128x128xf32>, vector<8x128xf32> -> vector<8x128xf32>
    %93 = vector.broadcast %82 : vector<1x128xf32> to vector<8x128xf32>
    %94 = arith.addf %92, %93 : vector<8x128xf32>
    %95 = arith.addf %94, %91 : vector<8x128xf32>
    %cst_46 = arith.constant dense<0.000000e+00> : vector<8xf32>
    %96 = vector.multi_reduction <add>, %95, %cst_46 [1] : vector<8x128xf32> to vector<8xf32>
    %97 = vector.shape_cast %96 : vector<8xf32> to vector<8x1xf32>
    %cst_47 = arith.constant 3.125000e-02 : f32
    %98 = vector.broadcast %cst_47 : f32 to vector<8x1xf32>
    %99 = arith.mulf %97, %98 : vector<8x1xf32>
    %100 = vector.broadcast %99 : vector<8x1xf32> to vector<8x128xf32>
    %101 = arith.subf %95, %100 : vector<8x128xf32>
    %cst_48 = arith.constant 0.000000e+00 : f32
    %102 = vector.broadcast %cst_48 : f32 to vector<8x128xf32>
    %103 = arith.select %12, %101, %102 : vector<8x128xi1>, vector<8x128xf32>
    %104 = arith.mulf %103, %103 : vector<8x128xf32>
    %cst_49 = arith.constant dense<0.000000e+00> : vector<8xf32>
    %105 = vector.multi_reduction <add>, %104, %cst_49 [1] : vector<8x128xf32> to vector<8xf32>
    %106 = vector.shape_cast %105 : vector<8xf32> to vector<8x1xf32>
    %cst_50 = arith.constant 3.125000e-02 : f32
    %107 = vector.broadcast %cst_50 : f32 to vector<8x1xf32>
    %108 = arith.mulf %106, %107 : vector<8x1xf32>
    %cst_51 = arith.constant 9.99999974E-6 : f32
    %109 = vector.broadcast %cst_51 : f32 to vector<8x1xf32>
    %110 = arith.addf %108, %109 : vector<8x1xf32>
    %111 = math.rsqrt %110 : vector<8x1xf32>
    %112 = vector.broadcast %111 : vector<8x1xf32> to vector<8x128xf32>
    %113 = arith.mulf %103, %112 : vector<8x128xf32>
    %114 = vector.broadcast %83 : vector<1x128xf32> to vector<8x128xf32>
    %115 = arith.mulf %113, %114 : vector<8x128xf32>
    %116 = vector.broadcast %84 : vector<1x128xf32> to vector<8x128xf32>
    %117 = arith.addf %115, %116 : vector<8x128xf32>
    %c0_52 = arith.constant 0 : index
    %c0_53 = arith.constant 0 : index
    %118 = vector.load %arg14[%c0_52, %c0_53] : memref<8x128xf32, #tpu.memory_space<vmem>>, vector<8x128xf32>
    tpu.vector_store %arg14[%c0_52, %c0_53], %117 {strides = array<i32>} : memref<8x128xf32, #tpu.memory_space<vmem>>, vector<8x128xf32>,
    return
  }
  func.func @transform_0(%arg0: i32) -> (i32, i32) {
    %c0_i32 = arith.constant 0 : i32
    %c0_i32_0 = arith.constant 0 : i32
    return %arg0, %c0_i32 : i32, i32
  }
  func.func @transform_1(%arg0: i32) -> (i32, i32) {
    %c0_i32 = arith.constant 0 : i32
    %c0_i32_0 = arith.constant 0 : i32
    %c0_i32_1 = arith.constant 0 : i32
    return %c0_i32, %c0_i32_0 : i32, i32
  }
  func.func @transform_2(%arg0: i32) -> (i32, i32) {
    %c0_i32 = arith.constant 0 : i32
    %c0_i32_0 = arith.constant 0 : i32
    %c0_i32_1 = arith.constant 0 : i32
    return %c0_i32, %c0_i32_0 : i32, i32
  }
  func.func @transform_3(%arg0: i32) -> (i32, i32) {
    %c0_i32 = arith.constant 0 : i32
    %c0_i32_0 = arith.constant 0 : i32
    %c0_i32_1 = arith.constant 0 : i32
    return %c0_i32, %c0_i32_0 : i32, i32
  }
  func.func @transform_4(%arg0: i32) -> (i32, i32) {
    %c0_i32 = arith.constant 0 : i32
    %c0_i32_0 = arith.constant 0 : i32
    %c0_i32_1 = arith.constant 0 : i32
    return %c0_i32, %c0_i32_0 : i32, i32
  }
  func.func @transform_5(%arg0: i32) -> (i32, i32) {
    %c0_i32 = arith.constant 0 : i32
    %c0_i32_0 = arith.constant 0 : i32
    %c0_i32_1 = arith.constant 0 : i32
    return %c0_i32, %c0_i32_0 : i32, i32
  }
  func.func @transform_6(%arg0: i32) -> (i32, i32) {
    %c0_i32 = arith.constant 0 : i32
    %c0_i32_0 = arith.constant 0 : i32
    %c0_i32_1 = arith.constant 0 : i32
    return %c0_i32, %c0_i32_0 : i32, i32
  }
  func.func @transform_7(%arg0: i32) -> (i32, i32) {
    %c0_i32 = arith.constant 0 : i32
    %c0_i32_0 = arith.constant 0 : i32
    %c0_i32_1 = arith.constant 0 : i32
    return %c0_i32, %c0_i32_0 : i32, i32
  }
  func.func @transform_8(%arg0: i32) -> (i32, i32) {
    %c0_i32 = arith.constant 0 : i32
    %c0_i32_0 = arith.constant 0 : i32
    %c0_i32_1 = arith.constant 0 : i32
    return %c0_i32, %c0_i32_0 : i32, i32
  }
  func.func @transform_9(%arg0: i32) -> (i32, i32) {
    %c0_i32 = arith.constant 0 : i32
    %c0_i32_0 = arith.constant 0 : i32
    %c0_i32_1 = arith.constant 0 : i32
    return %c0_i32, %c0_i32_0 : i32, i32
  }
  func.func @transform_10(%arg0: i32) -> (i32, i32) {
    %c0_i32 = arith.constant 0 : i32
    %c0_i32_0 = arith.constant 0 : i32
    %c0_i32_1 = arith.constant 0 : i32
    return %c0_i32, %c0_i32_0 : i32, i32
  }
  func.func @transform_11(%arg0: i32) -> (i32, i32) {
    %c0_i32 = arith.constant 0 : i32
    %c0_i32_0 = arith.constant 0 : i32
    %c0_i32_1 = arith.constant 0 : i32
    return %c0_i32, %c0_i32_0 : i32, i32
  }
  func.func @transform_12(%arg0: i32) -> (i32, i32) {
    %c0_i32 = arith.constant 0 : i32
    %c0_i32_0 = arith.constant 0 : i32
    %c0_i32_1 = arith.constant 0 : i32
    return %c0_i32, %c0_i32_0 : i32, i32
  }
  func.func @transform_13(%arg0: i32) -> (i32, i32) {
    %c0_i32 = arith.constant 0 : i32
    %c0_i32_0 = arith.constant 0 : i32
    return %arg0, %c0_i32 : i32, i32
  }
}

</mosaic_0001>

<bundles_post_ra>
// kernel: tpu_custom_call.1
= control target key start
LH: loop header
LB: loop body
LE: loop exit
PB: predicated region body
PF: predicated region fallthrough
CT: control target
= control target key end

     0   :  { %18 = vsyncpa [#allocation3], 0  ;;  %s1553_s0 = inlined_call_operand.hbm [shape: f32[8,128], index: 0, kind: input, shape index: {}]   ;;  %s1554_s1 = inlined_call_operand.hbm [shape: f32[128,256], index: 1, kind: input, shape index: {}]   ;;  %s1555_s2 = inlined_call_operand.vmem [shape: f32[1,256], index: 2, kind: input, shape index: {}]   ;;  %s1556_s3 = inlined_call_operand.hbm [shape: f32[128,128], index: 3, kind: input, shape index: {}]   ;;  %s1557_s4 = inlined_call_operand.vmem [shape: f32[1,128], index: 4, kind: input, shape index: {}]   ;;  %s1558_s5 = inlined_call_operand.vmem [shape: f32[1,128], index: 5, kind: input, shape index: {}]   ;;  %s1559_s6 = inlined_call_operand.vmem [shape: f32[1,128], index: 6, kind: input, shape index: {}]   ;;  %s1560_s7 = inlined_call_operand.hbm [shape: f32[128,256], index: 7, kind: input, shape index: {}]   ;;  %s1561_s8 = inlined_call_operand.vmem [shape: f32[1,256], index: 8, kind: input, shape index: {}]   ;;  %s1562_s9 = inlined_call_operand.hbm [shape: f32[128,128], index: 9, kind: input, shape index: {}]   ;;  %s1563_s10 = inlined_call_operand.vmem [shape: f32[1,128], index: 10, kind: input, shape index: {}]   ;;  %s1564_s11 = inlined_call_operand.vmem [shape: f32[1,128], index: 11, kind: input, shape index: {}]   ;;  %s1565_s12 = inlined_call_operand.vmem [shape: f32[1,128], index: 12, kind: input, shape index: {}]   ;;  %s1566_s13 = inlined_call_operand.hbm [shape: f32[8,128], index: 13, kind: output, shape index: {}]  }
   0x1   :  { %19 = vsyncpa [#allocation6], 0 }
   0x2   :  { %20 = vsyncpa [#allocation9], 0 }
   0x3   :  { %21 = vsyncpa [#allocation4], 0  ;;  %s1255_s25 = smov [#allocation5]   ;;  %s1115_s29 = scalar_lea.hbm %s1554_s1, 4096 }
   0x4   :  { %s37_s26 = sshll.u32 %s1255_s25, 4  ;;  %p1116_p0 = scmp.ne.s32.totalorder %s1554_s1, %s1115_s29  ;;  %s38_s26 = int_to_ptr.vmem [resolvable:$true] %s37_s26 }
   0x5   :  { %p1119_p1 = scmp.lt.u32.totalorder %s1115_s29, %s1554_s1 }
   0x7   :  { %p1121_p2 = pnand %p1119_p1, %p1116_p0 }
   0x9   :  { %1124 = shalt.err (!%p1121_p2)
}
   0xa   :  { %s1125_s17 = scalar_lea.vmem %s38_s26, 4096  ;;  %p1130_p4 = scmp.lt.s32.totalorder %s38_s26, %s38_s26 }
   0xb   :  { %p1126_p3 = scmp.ne.s32.totalorder %s38_s26, %s1125_s17  ;;  %p1131_p5 = scmp.lt.s32.totalorder %s1125_s17, %s1125_s17 }
   0xd   :  { %p1132_p6 = por %p1131_p5, %p1130_p4 }
   0xf   :  { %p1133_p7 = pnand %p1132_p6, %p1126_p3 }
  0x11   :  { %1136 = shalt.err (!%p1133_p7)
}
  0x12   :  { %s1256_s18 = smov 256   ;;  %s1257_s19 = smov 16  }
  0x13   :  { %43 = dma.hbm_to_vmem [thread:$0]  %s1554_s1, 4096, %s38_s26, [#allocation6], %s1256_s18, %s1256_s18, %s1257_s19  }
  0x14   :  { %s1258_s22 = smov [#allocation8]   ;;  %s1259_s24 = smov [#allocation2]  }
  0x15   :  { %s69_s23 = sshll.u32 %s1258_s22, 4  ;;  %s28_s25 = sshll.u32 %s1259_s24, 4  ;;  %s70_s23 = int_to_ptr.vmem [resolvable:$true] %s69_s23  ;;  %s29_s25 = int_to_ptr.vmem [resolvable:$true] %s28_s25 }
  0x16   :  { %s1137_s29 = scalar_lea.hbm %s1560_s7, 4096 }
  0x17   :  { %p1138_p8 = scmp.ne.s32.totalorder %s1560_s7, %s1137_s29  ;;  %p1141_p9 = scmp.lt.u32.totalorder %s1137_s29, %s1560_s7 }
  0x19   :  { %p1143_p10 = pnand %p1141_p9, %p1138_p8 }
  0x1b   :  { %1146 = shalt.err (!%p1143_p10)
}
  0x1c   :  { %s1147_s1 = scalar_lea.vmem %s70_s23, 4096  ;;  %p1152_p12 = scmp.lt.s32.totalorder %s70_s23, %s70_s23 }
  0x1d   :  { %p1148_p11 = scmp.ne.s32.totalorder %s70_s23, %s1147_s1  ;;  %p1153_p13 = scmp.lt.s32.totalorder %s1147_s1, %s1147_s1 }
  0x1f   :  { %p1154_p0 = por %p1153_p13, %p1152_p12 }
  0x21   :  { %p1155_p1 = pnand %p1154_p0, %p1148_p11 }
  0x23   :  { %1158 = shalt.err (!%p1155_p1)
}
  0x24   :  { %75 = dma.hbm_to_vmem [thread:$0]  %s1560_s7, 4096, %s70_s23, [#allocation9], %s1256_s18, %s1256_s18, %s1257_s19  }
  0x25   :  { %s1159_s22 = scalar_lea.hbm %s1553_s0, 128 }
  0x26   :  { %p1160_p2 = scmp.ne.s32.totalorder %s1553_s0, %s1159_s22  ;;  %p1163_p3 = scmp.lt.u32.totalorder %s1159_s22, %s1553_s0 }
  0x28   :  { %p1165_p4 = pnand %p1163_p3, %p1160_p2 }
  0x2a   :  { %1168 = shalt.err (!%p1165_p4)
}
  0x2b   :  { %s1169_s30 = scalar_lea.vmem %s29_s25, 128  ;;  %p1174_p6 = scmp.lt.s32.totalorder %s29_s25, %s29_s25 }
  0x2c   :  { %p1170_p5 = scmp.ne.s32.totalorder %s29_s25, %s1169_s30  ;;  %p1175_p7 = scmp.lt.s32.totalorder %s1169_s30, %s1169_s30 }
  0x2e   :  { %p1176_p8 = por %p1175_p7, %p1174_p6 }
  0x30   :  { %p1177_p9 = pnand %p1176_p8, %p1170_p5 }
  0x32   :  { %1180 = shalt.err (!%p1177_p9)
}
  0x33   :  { %31 = dma.hbm_to_vmem [thread:$0]  %s1553_s0, 128, %s29_s25, [#allocation3]  }
  0x34   :  { %s1260_s19 = smov [#allocation7]   ;;  %s1181_s16 = scalar_lea.hbm %s1556_s3, 2048 }
  0x35   :  { %s51_s23 = sshll.u32 %s1260_s19, 4  ;;  %p1182_p10 = scmp.ne.s32.totalorder %s1556_s3, %s1181_s16  ;;  %s52_s23 = int_to_ptr.vmem [resolvable:$true] %s51_s23 }
  0x36   :  { %p1185_p11 = scmp.lt.u32.totalorder %s1181_s16, %s1556_s3 }
  0x38   :  { %p1187_p12 = pnand %p1185_p11, %p1182_p10 }
  0x3a   :  { %1190 = shalt.err (!%p1187_p12)
}
  0x3b   :  { %s1191_s21 = scalar_lea.vmem %s52_s23, 2048  ;;  %p1196_p0 = scmp.lt.s32.totalorder %s52_s23, %s52_s23 }
  0x3c   :  { %p1192_p13 = scmp.ne.s32.totalorder %s52_s23, %s1191_s21  ;;  %p1197_p1 = scmp.lt.s32.totalorder %s1191_s21, %s1191_s21 }
  0x3e   :  { %p1198_p2 = por %p1197_p1, %p1196_p0 }
  0x40   :  { %p1199_p3 = pnand %p1198_p2, %p1192_p13 }
  0x42   :  { %1202 = shalt.err (!%p1199_p3)
}
  0x43   :  { %s1261_s0 = smov 128   ;;  %s1262_s25 = smov 8  }
  0x44   :  { %57 = dma.hbm_to_vmem [thread:$0]  %s1556_s3, 2048, %s52_s23, [#allocation6], %s1261_s0, %s1261_s0, %s1262_s25  }
  0x45   :  { %s1263_s27 = smov [#allocation10]   ;;  %s1203_s7 = scalar_lea.hbm %s1562_s9, 2048 }
  0x46   :  { %s83_s28 = sshll.u32 %s1263_s27, 4  ;;  %p1204_p4 = scmp.ne.s32.totalorder %s1562_s9, %s1203_s7  ;;  %s84_s28 = int_to_ptr.vmem [resolvable:$true] %s83_s28 }
  0x47   :  { %p1207_p5 = scmp.lt.u32.totalorder %s1203_s7, %s1562_s9 }
  0x49   :  { %p1209_p6 = pnand %p1207_p5, %p1204_p4 }
  0x4b   :  { %1212 = shalt.err (!%p1209_p6)
}
  0x4c   :  { %s1213_s16 = scalar_lea.vmem %s84_s28, 2048  ;;  %p1218_p8 = scmp.lt.s32.totalorder %s84_s28, %s84_s28 }
  0x4d   :  { %p1214_p7 = scmp.ne.s32.totalorder %s84_s28, %s1213_s16  ;;  %p1219_p9 = scmp.lt.s32.totalorder %s1213_s16, %s1213_s16 }
  0x4f   :  { %p1220_p10 = por %p1219_p9, %p1218_p8 }
  0x51   :  { %p1221_p11 = pnand %p1220_p10, %p1214_p7 }
  0x53   :  { %1224 = shalt.err (!%p1221_p11)
}
  0x54   :  { %89 = dma.hbm_to_vmem [thread:$0]  %s1562_s9, 2048, %s84_s28, [#allocation9], %s1261_s0, %s1261_s0, %s1262_s25  }
  0x55   :  { %1247 = dma.done.wait [#allocation3], 128  }
  0x56   :  { %1248 = vsyncadd [#allocation3], 4294967168 }
  0x57   :  { %1249 = dma.done.wait [#allocation6], 6144  }
  0x58   :  { %1250 = vsyncadd [#allocation6], 4294961152 }
  0x59   :  { %1251 = dma.done.wait [#allocation9], 6144  }
  0x5a   :  { %1252 = vsyncadd [#allocation9], 4294961152  ;;  %v1264_v0 = vmov 0.0   ;;  %v1265_v1 = vmov 0.0|0.0   ;;  %v113_v2 = vld [vmem:[#allocation5 + $0x8] sm:$0xff]  ;;  %v115_v3 = vld [vmem:[#allocation5 + $0x18] sm:$0xff] }
  0x5b   :  { %242 = vmatprep.mubr.f32.mxu0 %v1264_v0  ;;  %960 = vmatprep.subr.bf16.mxu1 %v1265_v1  ;;  %v112_v4 = vld [vmem:[#allocation5] sm:$0xff]  ;;  %v1400_v5 = vpack.c.bf16 %v115_v3, %v113_v2  ;;  %v114_v6 = vld [vmem:[#allocation5 + $0x10] sm:$0xff]  ;;  %v117_v7 = vld [vmem:[#allocation5 + $0x28] sm:$0xff]  ;;  %vm1266_vm0 = vmmov 0   ;;  %s1267_s27 = smov [#allocation11]  }
  0x5c   :  { %v119_v8 = vld [vmem:[#allocation5 + $0x38] sm:$0xff]  ;;  %v1402_v9 = vpack.c.bf16 %v114_v6, %v112_v4  ;;  %v116_v11 = vld [vmem:[#allocation5 + $0x20] sm:$0xff]  ;;  %v118_v12 = vld [vmem:[#allocation5 + $0x30] sm:$0xff]  ;;  %855 = vmatprep.mubr.msk.f32.mxu1 %vm1266_vm0, %v1264_v0  ;;  %s755_s28 = sshll.u32 %s1267_s27, 4  ;;  %s756_s28 = int_to_ptr.vmem [resolvable:$true] %s755_s28 }
  0x5d   :  { %v1404_v10 = vpack.c.bf16 %v119_v8, %v117_v7  ;;  %v121_v13 = vld [vmem:[#allocation5 + $0x48] sm:$0xff]  ;;  %929 = vmatprep.subr.bf16.mxu0 %v1400_v5  ;;  %v123_v14 = vld [vmem:[#allocation5 + $0x58] sm:$0xff]  ;;  %v1408_v15 = vpack.c.bf16 %v118_v12, %v116_v11  ;;  %v120_v17 = vld [vmem:[#allocation5 + $0x40] sm:$0xff]  ;;  %s1225_s29 = scalar_lea.vmem %s756_s28, 128  ;;  %p1230_p13 = scmp.lt.s32.totalorder %s756_s28, %s756_s28 }
  0x5e   :  { %931 = vmatpush1.bf16.msra.mxu0 %v1402_v9  ;;  %v1411_v16 = vpack.c.bf16 %v123_v14, %v121_v13  ;;  %v122_v18 = vld [vmem:[#allocation5 + $0x50] sm:$0xff]  ;;  %v125_v19 = vld [vmem:[#allocation5 + $0x68] sm:$0xff]  ;;  %v127_v20 = vld [vmem:[#allocation5 + $0x78] sm:$0xff]  ;;  %v164_v13 = vlaneseq  ;;  %p1226_p12 = scmp.ne.s32.totalorder %s756_s28, %s1225_s29  ;;  %p1231_p0 = scmp.lt.s32.totalorder %s1225_s29, %s1225_s29 }
  0x5f   :  { %933 = vmatprep.subr.bf16.mxu0 %v1404_v10  ;;  %v1414_v21 = vpack.c.bf16 %v122_v18, %v120_v17  ;;  %v1417_v22 = vpack.c.bf16 %v127_v20, %v125_v19  ;;  %v124_v23 = vld [vmem:[#allocation5 + $0x60] sm:$0xff]  ;;  %v126_v24 = vld [vmem:[#allocation5 + $0x70] sm:$0xff]  ;;  %v129_v25 = vld [vmem:[#allocation5 + $0x88] sm:$0xff] }
  0x60   :  { %v131_v26 = vld [vmem:[#allocation5 + $0x98] sm:$0xff]  ;;  %v145_v27 = vld [vmem:[#allocation7] sm:$0xff]  ;;  %v146_v28 = vld [vmem:[#allocation7 + $0x8] sm:$0xff]  ;;  %v1420_v30 = vpack.c.bf16 %v126_v24, %v124_v23  ;;  %v1459_v14 = vshrl.u32 %v164_v13, 7  ;;  %p1232_p1 = por %p1231_p0, %p1230_p13 }
  0x61   :  { %v147_v29 = vld [vmem:[#allocation7 + $0x10] sm:$0xff]  ;;  %v1422_v31 = vpack.c.bf16 %v146_v28, %v145_v27  ;;  %v148_v32 = vld [vmem:[#allocation7 + $0x18] sm:$0xff]  ;;  %v1425_v33 = vpack.c.bf16 %v131_v26, %v129_v25  ;;  %v128_v34 = vld [vmem:[#allocation5 + $0x80] sm:$0xff] }
  0x62   :  { %935 = vmatpush1.bf16.msra.mxu0 %v1408_v15  ;;  %v130_v35 = vld [vmem:[#allocation5 + $0x90] sm:$0xff]  ;;  %v133_v36 = vld [vmem:[#allocation5 + $0xa8] sm:$0xff]  ;;  %v135_v37 = vld [vmem:[#allocation5 + $0xb8] sm:$0xff]  ;;  %v1428_v38 = vpack.c.bf16 %v148_v32, %v147_v29  ;;  %p1233_p2 = pnand %p1232_p1, %p1226_p12 }
  0x63   :  { %937 = vmatprep.subr.bf16.mxu0 %v1411_v16  ;;  %962 = vmatpush3.bf16.msra.mxu1 %v1422_v31  ;;  %v149_v39 = vld [vmem:[#allocation7 + $0x20] sm:$0xff]  ;;  %v150_v40 = vld [vmem:[#allocation7 + $0x28] sm:$0xff]  ;;  %v946_v41 = vpack.c.bf16 %v130_v35, %v128_v34  ;;  %v948_v42 = vpack.c.bf16 %v135_v37, %v133_v36  ;;  %v134_v44 = vld [vmem:[#allocation5 + $0xb0] sm:$0xff] }
  0x64   :  { %963 = vmatprep.subr.bf16.mxu1 %v1265_v1  ;;  %v132_v43 = vld [vmem:[#allocation5 + $0xa0] sm:$0xff]  ;;  %v137_v45 = vld [vmem:[#allocation5 + $0xc8] sm:$0xff]  ;;  %v139_v46 = vld [vmem:[#allocation5 + $0xd8] sm:$0xff]  ;;  %v1434_v47 = vpack.c.bf16 %v150_v40, %v149_v39 }
  0x65   :  { %v151_v48 = vld [vmem:[#allocation7 + $0x30] sm:$0xff]  ;;  %v152_v49 = vld [vmem:[#allocation7 + $0x38] sm:$0xff]  ;;  %v950_v50 = vpack.c.bf16 %v134_v44, %v132_v43  ;;  %v952_v51 = vpack.c.bf16 %v139_v46, %v137_v45  ;;  %v136_v52 = vld [vmem:[#allocation5 + $0xc0] sm:$0xff] }
  0x66   :  { %939 = vmatpush1.bf16.msra.mxu0 %v1414_v21  ;;  %v138_v53 = vld [vmem:[#allocation5 + $0xd0] sm:$0xff]  ;;  %v141_v54 = vld [vmem:[#allocation5 + $0xe8] sm:$0xff]  ;;  %v143_v55 = vld [vmem:[#allocation5 + $0xf8] sm:$0xff]  ;;  %v1438_v56 = vpack.c.bf16 %v152_v49, %v151_v48 }
  0x67   :  { %941 = vmatprep.subr.bf16.mxu0 %v1417_v22  ;;  %965 = vmatpush3.bf16.msra.mxu1 %v1428_v38  ;;  %v153_v57 = vld [vmem:[#allocation7 + $0x40] sm:$0xff]  ;;  %v154_v58 = vld [vmem:[#allocation7 + $0x48] sm:$0xff]  ;;  %v954_v59 = vpack.c.bf16 %v138_v53, %v136_v52  ;;  %v956_v60 = vpack.c.bf16 %v143_v55, %v141_v54  ;;  %v142_v62 = vld [vmem:[#allocation5 + $0xf0] sm:$0xff] }
  0x68   :  { %966 = vmatprep.subr.bf16.mxu1 %v1265_v1  ;;  %v140_v61 = vld [vmem:[#allocation5 + $0xe0] sm:$0xff]  ;;  %v973_v63 = vpack.c.bf16 %v154_v58, %v153_v57  ;;  %v155_v2 = vld [vmem:[#allocation7 + $0x50] sm:$0xff]  ;;  %v156_v3 = vld [vmem:[#allocation7 + $0x58] sm:$0xff] }
  0x69   :  { %v958_v4 = vpack.c.bf16 %v142_v62, %v140_v61  ;;  %v976_v6 = vpack.c.bf16 %v156_v3, %v155_v2  ;;  %v157_v7 = vld [vmem:[#allocation7 + $0x60] sm:$0xff]  ;;  %v158_v8 = vld [vmem:[#allocation7 + $0x68] sm:$0xff]  ;;  %v111_v11 = vld [vmem:[#allocation2] sm:$0xff] }
  0x6a   :  { %943 = vmatpush1.bf16.msra.mxu0 %v1420_v30  ;;  %v979_v12 = vpack.c.bf16 %v158_v8, %v157_v7  ;;  %v766_v24 = vld [vmem:[%s1557_s4] ss:$0 sm:$0xff]  ;;  %v511_v54 = vld [vmem:[#allocation8 + $0x8] sm:$0xff]  ;;  %v512_v58 = vld [vmem:[#allocation8 + $0x10] sm:$0xff] }
  0x6b   :  { %945 = vmatprep.subr.bf16.mxu0 %v1425_v33  ;;  %968 = vmatpush3.bf16.msra.mxu1 %v1434_v47  ;;  %v1495_v40 = vld [vmem:[%s1558_s5] ss:$0 sm:$0xff]  ;;  %v516_v2 = vld [vmem:[#allocation8 + $0x30] sm:$0xff]  ;;  %v519_v3 = vld [vmem:[#allocation8 + $0x48] sm:$0xff] }
  0x6c   :  { %969 = vmatprep.subr.bf16.mxu1 %v1265_v1  ;;  %v513_v55 = vld [vmem:[#allocation8 + $0x18] sm:$0xff]  ;;  %v518_v7 = vld [vmem:[#allocation8 + $0x40] sm:$0xff]  ;;  %v520_v8 = vld [vmem:[#allocation8 + $0x50] sm:$0xff] }
  0x6d   :  { %v1040_v57 = vpack.c.bf16 %v513_v55, %v511_v54  ;;  %v546_v54 = vld [vmem:[#allocation10 + $0x18] sm:$0xff] }
  0x6e   :  { %947 = vmatpush1.bf16.msra.mxu0 %v946_v41 }
  0x6f   :  { %949 = vmatprep.subr.bf16.mxu0 %v948_v42  ;;  %971 = vmatpush3.bf16.msra.mxu1 %v1438_v56 }
  0x70   :  { %972 = vmatprep.subr.bf16.mxu1 %v1265_v1 }
  0x72   :  { %951 = vmatpush1.bf16.msra.mxu0 %v950_v50 }
  0x73   :  { %953 = vmatprep.subr.bf16.mxu0 %v952_v51  ;;  %974 = vmatpush3.bf16.msra.mxu1 %v973_v63 }
  0x74   :  { %975 = vmatprep.subr.bf16.mxu1 %v1265_v1 }
  0x76   :  { %955 = vmatpush1.bf16.msra.mxu0 %v954_v59 }
  0x77   :  { %957 = vmatprep.subr.bf16.mxu0 %v956_v60  ;;  %977 = vmatpush3.bf16.msra.mxu1 %v976_v6 }
  0x78   :  { %978 = vmatprep.subr.bf16.mxu1 %v1265_v1 }
  0x7a   :  { %959 = vmatpush1.bf16.msra.mxu0 %v958_v4 }
  0x7b   :  { %985 = vmatprep.subr.bf16.mxu0 %v1400_v5  ;;  %980 = vmatpush3.bf16.msra.mxu1 %v979_v12  ;;  %v159_v5 = vld [vmem:[#allocation7 + $0x70] sm:$0xff] }
  0x7c   :  { %981 = vmatprep.subr.bf16.mxu1 %v1265_v1 }
  0x7d   :  { %243 = vmatmul.mubr.f32.vlgmr.msra.gmra.mrb[0].mxu0 %v111_v11  ;;  %v1050_v11 = vpack.c.bf16 %v520_v8, %v518_v7  ;;  %v556_v7 = vld [vmem:[#allocation10 + $0x68] sm:$0xff] }
  0x7e   :  { %987 = vmatpush1.bf16.msra.mxu0 %v1402_v9  ;;  %417 = vmatprep.mubr.f32.mxu0 %v1264_v0  ;;  %v160_v9 = vld [vmem:[#allocation7 + $0x78] sm:$0xff] }
  0x7f   :  { %989 = vmatprep.subr.bf16.mxu0 %v1404_v10  ;;  %v982_v10 = vpack.c.bf16 %v160_v9, %v159_v5 }
  0x81   :  { %983 = vmatpush3.bf16.msra.mxu1 %v982_v10 }
  0x82   :  { %991 = vmatpush1.bf16.msra.mxu0 %v1408_v15  ;;  %1016 = vmatprep.subr.bf16.mxu1 %v1265_v1  ;;  %v170_v15 = vsub.s32 0, %v1459_v14 }
  0x83   :  { %993 = vmatprep.subr.bf16.mxu0 %v1411_v16  ;;  %v144_v16 = vld [vmem:[%s1555_s2] sm:$0x3] }
  0x84   :  { %v171_v17 = vrot.slane %v144_v16, %v170_v15 }
  0x86   :  { %995 = vmatpush1.bf16.msra.mxu0 %v1414_v21 }
  0x87   :  { %997 = vmatprep.subr.bf16.mxu0 %v1417_v22  ;;  %v174_v22 = vsub.s32 1, %v1459_v14 }
  0x89   :  { %v175_v23 = vrot.slane %v144_v16, %v174_v22  ;;  %v523_v16 = vld [vmem:[#allocation8 + $0x68] sm:$0xff] }
  0x8a   :  { %999 = vmatpush1.bf16.msra.mxu0 %v1420_v30  ;;  %v1487_v30 = vand.u32 127, %v164_v13 }
  0x8b   :  { %1001 = vmatprep.subr.bf16.mxu0 %v1425_v33 }
  0x8c   :  { %vm166_vm1 = vcmp.lt.s32.totalorder %v1487_v30, 32 }
  0x8e   :  { %1003 = vmatpush1.bf16.msra.mxu0 %v946_v41 }
  0x8f   :  { %1005 = vmatprep.subr.bf16.mxu0 %v948_v42  ;;  %v1500_v42 = vld [vmem:[%s1559_s6] ss:$0 sm:$0xff] }
  0x92   :  { %1007 = vmatpush1.bf16.msra.mxu0 %v950_v50 }
  0x93   :  { %1009 = vmatprep.subr.bf16.mxu0 %v952_v51 }
  0x96   :  { %1011 = vmatpush1.bf16.msra.mxu0 %v954_v59  ;;  %v515_v59 = vld [vmem:[#allocation8 + $0x28] sm:$0xff] }
  0x97   :  { %1013 = vmatprep.subr.bf16.mxu0 %v956_v60  ;;  %v517_v60 = vld [vmem:[#allocation8 + $0x38] sm:$0xff] }
  0x98   :  { %v1044_v62 = vpack.c.bf16 %v517_v60, %v515_v59  ;;  %v549_v59 = vld [vmem:[#allocation10 + $0x30] sm:$0xff]  ;;  %v550_v60 = vld [vmem:[#allocation10 + $0x38] sm:$0xff] }
  0x9a   :  { %1015 = vmatpush1.bf16.msra.mxu0 %v958_v4 }
  0x9b   :  { %1041 = vmatprep.subr.bf16.mxu0 %v1040_v57  ;;  %v548_v57 = vld [vmem:[#allocation10 + $0x28] sm:$0xff] }
 0x150   :  { %v244_v18 = vpop.f32.mrb[0].mxu0 }
 0x151   :  { %v245_v19 = vadd.f32 %v244_v18, %v171_v17  ;;  %v246_v20 = vpop.f32.mrb[1].mxu0 }
 0x152   :  { %v247_v26 = vadd.f32 %v246_v20, %v175_v23  ;;  %v524_v20 = vld [vmem:[#allocation8 + $0x70] sm:$0xff] }
 0x153   :  { %v249_v21 = vmax.f32 %v245_v19, 0.0  ;;  %v522_v19 = vld [vmem:[#allocation8 + $0x60] sm:$0xff] }
 0x155   :  { %856 = vmatmul.mubr.f32.vlgmr.msra.gmra.mrb[0].mxu1 %v249_v21  ;;  %v1054_v21 = vpack.c.bf16 %v524_v20, %v522_v19  ;;  %v558_v19 = vld [vmem:[#allocation10 + $0x78] sm:$0xff] }
 0x156   :  { %1018 = vmatpush3.bf16.msra.mxu1 %v1422_v31  ;;  %890 = vmatprep.mubr.msk.f32.mxu1 %vm1266_vm0, %v1264_v0 }
 0x157   :  { %1019 = vmatprep.subr.bf16.mxu1 %v1265_v1 }
 0x15a   :  { %1021 = vmatpush3.bf16.msra.mxu1 %v1428_v38 }
 0x15b   :  { %1022 = vmatprep.subr.bf16.mxu1 %v1265_v1 }
 0x15e   :  { %1024 = vmatpush3.bf16.msra.mxu1 %v1434_v47 }
 0x15f   :  { %1025 = vmatprep.subr.bf16.mxu1 %v1265_v1 }
 0x162   :  { %1027 = vmatpush3.bf16.msra.mxu1 %v1438_v56  ;;  %v510_v56 = vld [vmem:[#allocation8] sm:$0xff] }
 0x163   :  { %1028 = vmatprep.subr.bf16.mxu1 %v1265_v1  ;;  %v1042_v61 = vpack.c.bf16 %v512_v58, %v510_v56  ;;  %v547_v56 = vld [vmem:[#allocation10 + $0x20] sm:$0xff] }
 0x164   :  { %v1079_v58 = vpack.c.bf16 %v548_v57, %v547_v56 }
 0x166   :  { %1030 = vmatpush3.bf16.msra.mxu1 %v973_v63  ;;  %v514_v63 = vld [vmem:[#allocation8 + $0x20] sm:$0xff] }
 0x167   :  { %1031 = vmatprep.subr.bf16.mxu1 %v1265_v1  ;;  %v1046_v4 = vpack.c.bf16 %v516_v2, %v514_v63  ;;  %v552_v63 = vld [vmem:[#allocation10 + $0x48] sm:$0xff] }
 0x16a   :  { %1033 = vmatpush3.bf16.msra.mxu1 %v976_v6 }
 0x16b   :  { %1034 = vmatprep.subr.bf16.mxu1 %v1265_v1 }
 0x16e   :  { %1036 = vmatpush3.bf16.msra.mxu1 %v979_v12 }
 0x16f   :  { %1037 = vmatprep.subr.bf16.mxu1 %v1265_v1 }
 0x172   :  { %1039 = vmatpush3.bf16.msra.mxu1 %v982_v10 }
 0x173   :  { %1072 = vmatprep.subr.bf16.mxu1 %v1265_v1 }
 0x228   :  { %v322_v25 = vpop.f32.mrb[0].mxu1 }
 0x229   :  { %v323_v27 = vadd.f32 %v766_v24, %v322_v25  ;;  %v857_v28 = vpop.f32.mrb[1].mxu1 }
 0x22b   :  { %v326_v29 = vadd.f32 %v323_v27, %v247_v26  ;;  %v526_v26 = vld [vmem:[#allocation8 + $0x80] sm:$0xff]  ;;  %v528_v27 = vld [vmem:[#allocation8 + $0x90] sm:$0xff] }
 0x22c   :  { %v1058_v28 = vpack.c.bf16 %v528_v27, %v526_v26 }
 0x22d   :  { %327 = vadd.xlane.f32.xlu0 %v326_v29 }
 0x2ba   :  { %v328_v31 = vpop.xlane.xlu0 %327 }
 0x2bb   :  { %v329_v32 = vmul.f32 0.03125, %v328_v31  ;;  %v533_v31 = vld [vmem:[#allocation8 + $0xb8] sm:$0xff] }
 0x2bd   :  { %v330_v33 = vsub.f32 %v326_v29, %v329_v32  ;;  %v531_v29 = vld [vmem:[#allocation8 + $0xa8] sm:$0xff]  ;;  %v530_v32 = vld [vmem:[#allocation8 + $0xa0] sm:$0xff] }
 0x2bf   :  { %v331_v34 = vsel %vm166_vm1, %v330_v33, 0.0  ;;  %v1060_v33 = vpack.c.bf16 %v533_v31, %v531_v29 }
 0x2c0   :  { %v332_v35 = vmul.f32 %v331_v34, %v331_v34 }
 0x2c2   :  { %333 = vadd.xlane.f32.xlu0 %v332_v35  ;;  %v535_v35 = vld [vmem:[#allocation8 + $0xc8] sm:$0xff] }
 0x34f   :  { %v334_v36 = vpop.xlane.xlu0 %333 }
 0x350   :  { %v335_v37 = vmul.f32 0.03125, %v334_v36  ;;  %v537_v36 = vld [vmem:[#allocation8 + $0xd8] sm:$0xff] }
 0x352   :  { %v336_v38 = vadd.f32 1e-05, %v335_v37 }
 0x354   :  { %1109 = vrsqrt.f32 %v336_v38  ;;  %v1064_v38 = vpack.c.bf16 %v537_v36, %v535_v35 }
 0x35e   :  { %v1110_v39 = vpop.eup %1109 }
 0x35f   :  { %v338_v41 = vmul.f32 %v1110_v39, %v331_v34  ;;  %v532_v34 = vld [vmem:[#allocation8 + $0xb0] sm:$0xff]  ;;  %v534_v39 = vld [vmem:[#allocation8 + $0xc0] sm:$0xff] }
 0x360   :  { %v1062_v37 = vpack.c.bf16 %v532_v34, %v530_v32 }
 0x361   :  { %v345_v43 = vmul.f32 %v1495_v40, %v338_v41  ;;  %v536_v41 = vld [vmem:[#allocation8 + $0xd0] sm:$0xff] }
 0x363   :  { %v352_v44 = vadd.f32 %v1500_v42, %v345_v43  ;;  %v539_v43 = vld [vmem:[#allocation8 + $0xe8] sm:$0xff] }
 0x365   :  { %418 = vmatmul.mubr.f32.vlgmr.msra.gmra.mrb[2].mxu0 %v352_v44  ;;  %v541_v44 = vld [vmem:[#allocation8 + $0xf8] sm:$0xff] }
 0x366   :  { %637 = vmatprep.mubr.f32.mxu0 %v1264_v0  ;;  %1043 = vmatpush1.bf16.msra.mxu0 %v1042_v61  ;;  %v1082_v61 = vpack.c.bf16 %v550_v60, %v549_v59 }
 0x367   :  { %1045 = vmatprep.subr.bf16.mxu0 %v1044_v62  ;;  %v551_v62 = vld [vmem:[#allocation10 + $0x40] sm:$0xff] }
 0x368   :  { %v1085_v2 = vpack.c.bf16 %v552_v63, %v551_v62 }
 0x36a   :  { %1047 = vmatpush1.bf16.msra.mxu0 %v1046_v4 }
 0x438   :  { %v419_v45 = vpop.f32.mrb[2].mxu0 }
 0x439   :  { %v420_v46 = vadd.f32 %v419_v45, %v171_v17  ;;  %v421_v47 = vpop.f32.mrb[3].mxu0  ;;  %v525_v17 = vld [vmem:[#allocation8 + $0x78] sm:$0xff]  ;;  %v1066_v45 = vpack.c.bf16 %v536_v41, %v534_v39 }
 0x43a   :  { %v422_v50 = vadd.f32 %v421_v47, %v175_v23  ;;  %v1052_v18 = vpack.c.bf16 %v525_v17, %v523_v16  ;;  %v527_v23 = vld [vmem:[#allocation8 + $0x88] sm:$0xff]  ;;  %v538_v47 = vld [vmem:[#allocation8 + $0xe0] sm:$0xff]  ;;  %v771_v41 = vld [vmem:[%s1565_s12] ss:$0 sm:$0xff] }
 0x43b   :  { %v424_v48 = vmax.f32 %v420_v46, 0.0  ;;  %v1068_v46 = vpack.c.bf16 %v541_v44, %v539_v43 }
 0x43d   :  { %891 = vmatmul.mubr.f32.vlgmr.msra.gmra.mrb[2].mxu1 %v424_v48  ;;  %v540_v48 = vld [vmem:[#allocation8 + $0xf0] sm:$0xff] }
 0x43e   :  { %925 = vmatprep.mubr.msk.f32.mxu1 %vm1266_vm0, %v1264_v0  ;;  %v521_v0 = vld [vmem:[#allocation8 + $0x58] sm:$0xff] }
 0x43f   :  { %v1048_v6 = vpack.c.bf16 %v521_v0, %v519_v3  ;;  %v553_v3 = vld [vmem:[#allocation10 + $0x50] sm:$0xff]  ;;  %v554_v0 = vld [vmem:[#allocation10 + $0x58] sm:$0xff] }
 0x440   :  { %v1088_v4 = vpack.c.bf16 %v554_v0, %v553_v3 }
 0x441   :  { %1049 = vmatprep.subr.bf16.mxu0 %v1048_v6  ;;  %v555_v6 = vld [vmem:[#allocation10 + $0x60] sm:$0xff] }
 0x442   :  { %1051 = vmatpush1.bf16.msra.mxu0 %v1050_v11  ;;  %v1091_v8 = vpack.c.bf16 %v556_v7, %v555_v6 }
 0x443   :  { %1053 = vmatprep.subr.bf16.mxu0 %v1052_v18  ;;  %v557_v18 = vld [vmem:[#allocation10 + $0x70] sm:$0xff] }
 0x444   :  { %v1094_v20 = vpack.c.bf16 %v558_v19, %v557_v18 }
 0x446   :  { %1055 = vmatpush1.bf16.msra.mxu0 %v1054_v21 }
 0x510   :  { %v491_v49 = vpop.f32.mrb[2].mxu1 }
 0x511   :  { %v492_v51 = vadd.f32 %v766_v24, %v491_v49  ;;  %v892_v52 = vpop.f32.mrb[3].mxu1  ;;  %v529_v24 = vld [vmem:[#allocation8 + $0x98] sm:$0xff]  ;;  %v1070_v49 = vpack.c.bf16 %v540_v48, %v538_v47 }
 0x512   :  { %v1056_v25 = vpack.c.bf16 %v529_v24, %v527_v23  ;;  %v545_v52 = vld [vmem:[#allocation10 + $0x10] sm:$0xff] }
 0x513   :  { %v495_v53 = vadd.f32 %v492_v51, %v422_v50  ;;  %v543_v50 = vld [vmem:[#allocation10] sm:$0xff]  ;;  %v544_v51 = vld [vmem:[#allocation10 + $0x8] sm:$0xff]  ;;  %v1076_v55 = vpack.c.bf16 %v546_v54, %v545_v52 }
 0x514   :  { %1057 = vmatprep.subr.bf16.mxu0 %v1056_v25 }
 0x515   :  { %496 = vadd.xlane.f32.xlu1 %v495_v53  ;;  %1059 = vmatpush1.bf16.msra.mxu0 %v1058_v28 }
 0x516   :  { %1061 = vmatprep.subr.bf16.mxu0 %v1060_v33 }
 0x519   :  { %1063 = vmatpush1.bf16.msra.mxu0 %v1062_v37 }
 0x51a   :  { %1065 = vmatprep.subr.bf16.mxu0 %v1064_v38  ;;  %v770_v38 = vld [vmem:[%s1564_s11] ss:$0 sm:$0xff] }
 0x51d   :  { %1067 = vmatpush1.bf16.msra.mxu0 %v1066_v45 }
 0x51e   :  { %1069 = vmatprep.subr.bf16.mxu0 %v1068_v46 }
 0x521   :  { %1071 = vmatpush1.bf16.msra.mxu0 %v1070_v49 }
 0x5a2   :  { %v497_v12 = vpop.xlane.xlu1 %496 }
 0x5a3   :  { %v498_v5 = vmul.f32 0.03125, %v497_v12 }
 0x5a5   :  { %v499_v9 = vsub.f32 %v495_v53, %v498_v5  ;;  %v1073_v53 = vpack.c.bf16 %v544_v51, %v543_v50 }
 0x5a7   :  { %v1509_v10 = vsel %vm166_vm1, %v499_v9, 0.0  ;;  %1074 = vmatpush3.bf16.msra.mxu1 %v1073_v53 }
 0x5a8   :  { %v501_v13 = vmul.f32 %v1509_v10, %v1509_v10  ;;  %1075 = vmatprep.subr.bf16.mxu1 %v1265_v1 }
 0x5aa   :  { %502 = vadd.xlane.f32.xlu1 %v501_v13 }
 0x5ab   :  { %1077 = vmatpush3.bf16.msra.mxu1 %v1076_v55 }
 0x5ac   :  { %1078 = vmatprep.subr.bf16.mxu1 %v1265_v1 }
 0x5af   :  { %1080 = vmatpush3.bf16.msra.mxu1 %v1079_v58 }
 0x5b0   :  { %1081 = vmatprep.subr.bf16.mxu1 %v1265_v1 }
 0x5b3   :  { %1083 = vmatpush3.bf16.msra.mxu1 %v1082_v61 }
 0x5b4   :  { %1084 = vmatprep.subr.bf16.mxu1 %v1265_v1 }
 0x5b7   :  { %1086 = vmatpush3.bf16.msra.mxu1 %v1085_v2 }
 0x5b8   :  { %1087 = vmatprep.subr.bf16.mxu1 %v1265_v1 }
 0x5bb   :  { %1089 = vmatpush3.bf16.msra.mxu1 %v1088_v4 }
 0x5bc   :  { %1090 = vmatprep.subr.bf16.mxu1 %v1265_v1 }
 0x5bf   :  { %1092 = vmatpush3.bf16.msra.mxu1 %v1091_v8 }
 0x5c0   :  { %1093 = vmatprep.subr.bf16.mxu1 %v1265_v1  ;;  %v542_v1 = vld [vmem:[%s1561_s8] sm:$0x3] }
 0x5c1   :  { %v566_v21 = vrot.slane %v542_v1, %v170_v15 }
 0x5c3   :  { %1095 = vmatpush3.bf16.msra.mxu1 %v1094_v20 }
 0x637   :  { %v503_v11 = vpop.xlane.xlu1 %502 }
 0x638   :  { %v504_v12 = vmul.f32 0.03125, %v503_v11 }
 0x63a   :  { %v505_v5 = vadd.f32 1e-05, %v504_v12 }
 0x63c   :  { %1111 = vrsqrt.f32 %v505_v5 }
 0x646   :  { %v1112_v9 = vpop.eup %1111 }
 0x647   :  { %v507_v13 = vmul.f32 %v1112_v9, %v1509_v10 }
 0x649   :  { %v508_v16 = vmul.f32 %v1495_v40, %v507_v13  ;;  %v570_v40 = vrot.slane %v542_v1, %v174_v22 }
 0x64b   :  { %v509_v17 = vadd.f32 %v1500_v42, %v508_v16  ;;  %v769_v42 = vld [vmem:[%s1563_s10] ss:$0 sm:$0xff] }
 0x64d   :  { %638 = vmatmul.mubr.f32.vlgmr.msra.gmra.mrb[4].mxu0 %v509_v17 }
 0x720   :  { %v639_v23 = vpop.f32.mrb[4].mxu0 }
 0x721   :  { %v640_v24 = vadd.f32 %v639_v23, %v566_v21  ;;  %v641_v25 = vpop.f32.mrb[5].mxu0 }
 0x722   :  { %v642_v27 = vadd.f32 %v641_v25, %v570_v40 }
 0x723   :  { %v644_v10 = vmax.f32 %v640_v24, 0.0 }
 0x725   :  { %926 = vmatmul.mubr.f32.vlgmr.msra.gmra.mrb[4].mxu1 %v644_v10 }
 0x7f8   :  { %v717_v26 = vpop.f32.mrb[4].mxu1 }
 0x7f9   :  { %v718_v28 = vadd.f32 %v769_v42, %v717_v26  ;;  %v927_v29 = vpop.f32.mrb[5].mxu1 }
 0x7fb   :  { %v721_v31 = vadd.f32 %v718_v28, %v642_v27 }
 0x7fd   :  { %722 = vadd.xlane.f32.xlu0 %v721_v31 }
 0x88a   :  { %v723_v32 = vpop.xlane.xlu0 %722 }
 0x88b   :  { %v724_v15 = vmul.f32 0.03125, %v723_v32 }
 0x88d   :  { %v725_v33 = vsub.f32 %v721_v31, %v724_v15 }
 0x88f   :  { %v726_v34 = vsel %vm166_vm1, %v725_v33, 0.0 }
 0x890   :  { %v727_v35 = vmul.f32 %v726_v34, %v726_v34 }
 0x892   :  { %728 = vadd.xlane.f32.xlu1 %v727_v35 }
 0x91f   :  { %v729_v14 = vpop.xlane.xlu1 %728 }
 0x920   :  { %v730_v22 = vmul.f32 0.03125, %v729_v14 }
 0x922   :  { %v731_v36 = vadd.f32 1e-05, %v730_v22 }
 0x924   :  { %1113 = vrsqrt.f32 %v731_v36 }
 0x92e   :  { %v1114_v37 = vpop.eup %1113 }
 0x92f   :  { %v733_v39 = vmul.f32 %v1114_v37, %v726_v34 }
 0x931   :  { %v740_v30 = vmul.f32 %v770_v38, %v733_v39 }
 0x933   :  { %v747_v43 = vadd.f32 %v771_v41, %v740_v30 }
 0x935   :  { %748 = vst [vmem:[#allocation11] sm:$0xff] %v747_v43 }
 0x936   :  { %1236 = shalt.err (!%p1233_p2)
}
 0x937   :  { %s1237_s7 = scalar_lea.hbm %s1566_s13, 128 }
 0x938   :  { %p1238_p3 = scmp.ne.s32.totalorder %s1566_s13, %s1237_s7  ;;  %p1241_p4 = scmp.lt.u32.totalorder %s1237_s7, %s1566_s13 }
 0x93a   :  { %p1243_p5 = pnand %p1241_p4, %p1238_p3 }
 0x93c   :  { %1246 = shalt.err (!%p1243_p5)
}
 0x93d   :  { %758 = dma.vmem_to_hbm [thread:$0]  %s756_s28, 128, %s1566_s13, [#allocation4]  }
 0x93e   :  { %1253 = dma.done.wait [#allocation4], 128  }
 0x93f   :  { %1254 = vsyncadd [#allocation4], 4294967168 }
 0x940   :  { %762 = vsyncpa [#allocation3], 1 }
 0x941   :  { %763 = vsyncpa [#allocation6], 1 }
 0x942   :  { %764 = vsyncpa [#allocation9], 1 }
 0x943   :  { %765 = vsyncpa [#allocation4], 1 }

</bundles_post_ra>
